<compile_context>
chip_gen: v6e
topology: v6e:2x2x1
jax: 0.10.0
libtpu: 0.0.40
codegen_flags: <defaults>
</compile_context>

<pallas_src>
import jax
import jax.numpy as jnp
from jax.experimental import pallas as pl
from jax.experimental.pallas import tpu as pltpu


# ------------------------------------------------------------------ kernel ---
def _nerf_dino_fusion_kernel(
    x_ref,                                   # (tile, pos_dim+dino_dim) activations
    w1p_ref, w1d_ref, b1_ref,                # fusion layer 1 (zero-padded split W)
    w2_ref, b2_ref,                          # fusion layer 2
    a1_ref, ab1_ref,                         # attention layer 1
    a2d_ref, ab2d_ref,                       # folded attention layer 2 (logit diff)
    opw_ref, opb_ref,                        # output projection
    out_ref,                                 # lane-dense packed output block
):
    x = x_ref[...].astype(jnp.float32)

    b1 = b1_ref[...]
    b2 = b2_ref[...]

    # ---- fusion pass 1, layer 1: cache the split partial products -----------
    # w1p has the dino rows zeroed, w1d has the pos rows zeroed, so
    # P = pos @ W1[:pos], D = dino @ W1[pos:], and P + D == cat(pos,dino) @ W1.
    P = jnp.dot(x, w1p_ref[...], preferred_element_type=jnp.float32)
    D = jnp.dot(x, w1d_ref[...], preferred_element_type=jnp.float32)
    h1 = jnp.maximum(P + D + b1, 0.0)

    # ---- fusion pass 1, layer 2 ----------------------------------------------
    fused = jnp.maximum(
        jnp.dot(h1, w2_ref[...], preferred_element_type=jnp.float32) + b2, 0.0)

    # ---- attention gate: 2-way softmax == sigmoid of the logit difference ----
    a_h = jnp.maximum(
        jnp.dot(fused, a1_ref[...], preferred_element_type=jnp.float32)
        + ab1_ref[...], 0.0)
    # logit = a_h @ (a2[:,0]-a2[:,1]) + (ab2[0]-ab2[1]); done as mul + lane-sum
    logit = jnp.sum(a_h * a2d_ref[...], axis=-1, keepdims=True) + ab2d_ref[...]
    # exp + approx reciprocal both run on the EUP slot (idle otherwise).
    w_pos = pl.reciprocal(1.0 + jnp.exp(-logit), approx=True)   # (tile, 1)
    w_dino = 1.0 - w_pos

    # ---- fusion pass 2: reuse P, D  ((w*x) @ W == w * (x @ W), per-row w) ----
    h1b = jnp.maximum(w_pos * P + w_dino * D + b1, 0.0)
    final = jnp.maximum(
        jnp.dot(h1b, w2_ref[...], preferred_element_type=jnp.float32) + b2, 0.0)

    # ---- output projection ----------------------------------------------------
    out = (jnp.dot(final, opw_ref[...], preferred_element_type=jnp.float32)
           + opb_ref[...])                                       # (tile, hidden)

    # ---- lane-dense store: pack `pack` row-groups side-by-side in lanes,
    #      then ONE unmasked full-width (128-lane) store of the whole block ----
    hidden = out.shape[1]
    pack = out_ref.shape[1] // hidden          # static
    rows = out_ref.shape[0]                    # = tile // pack
    if pack > 1:
        out = jnp.concatenate(
            [out[c * rows:(c + 1) * rows, :] for c in range(pack)], axis=1)
    out_ref[...] = out.astype(out_ref.dtype)


# ----------------------------------------------------------------- wrapper ---
def _round_up(x, m):
    return ((x + m - 1) // m) * m


def nerf_dino_fusion(pos_encoding, dino_features, params, *, row_tile=4096):
    N, pos_dim = pos_encoding.shape
    _, dino_dim = dino_features.shape
    in_dim = pos_dim + dino_dim
    hidden = params["w2"].shape[1]
    att_h = params["a1"].shape[1]

    # Single concatenated activation array: one lane-padded DMA stream instead
    # of two narrow ones (the dominant HBM-traffic term at these widths).
    x = jnp.concatenate([pos_encoding, dino_features], axis=-1)     # (N, in_dim)

    # Lane-dense output packing: (N, hidden) is emitted as (N/pack, pack*hidden)
    # so stores / writeback use full 128-lane rows (pack*hidden == 128).
    pack = 128 // hidden if (hidden < 128 and 128 % hidden == 0) else 1
    unit = 8 * pack  # keeps the packed block's sublane dim a multiple of 8

    # Effective row tile: big (amortize per-step overhead), no larger than the
    # padded N, multiple of `unit`, and capped so there are >= 2 tiles whenever
    # the problem allows it (v7x: the "parallel" grid axis shards across 2 TCs).
    n_up = _round_up(N, unit)
    tile = min(_round_up(row_tile, unit), n_up)
    if n_up >= 2 * unit:
        tile = min(tile, _round_up(pl.cdiv(n_up, 2), unit))
    tile = max(tile, unit)

    padded_N = _round_up(N, tile)
    if padded_N != N:
        x = jnp.pad(x, ((0, padded_N - N), (0, 0)))

    # Zero-padded split of the fusion layer-1 weight: avoids in-kernel lane
    # slicing of x while keeping P / D separately available for pass-2 reuse.
    w1p_pad = jnp.concatenate(
        [params["w1p"], jnp.zeros((dino_dim, hidden), params["w1p"].dtype)], axis=0)
    w1d_pad = jnp.concatenate(
        [jnp.zeros((pos_dim, hidden), params["w1d"].dtype), params["w1d"]], axis=0)

    # Fold the 2-class softmax into a sigmoid gate on the logit difference.
    a2d = (params["a2"][:, 0] - params["a2"][:, 1]).reshape(1, att_h)
    ab2d = params["ab2"][:, 0:1] - params["ab2"][:, 1:2]            # (1, 1)

    num_tiles = padded_N // tile
    prows = tile // pack

    full = lambda shape: pl.BlockSpec(shape, lambda i: (0, 0))

    grid_spec = pltpu.PrefetchScalarGridSpec(
        num_scalar_prefetch=0,
        grid=(num_tiles,),
        in_specs=[
            pl.BlockSpec((tile, in_dim), lambda i: (i, 0)),   # x (pos|dino)
            full((in_dim, hidden)),    # w1p (dino rows zero)
            full((in_dim, hidden)),    # w1d (pos rows zero)
            full((1, hidden)),         # b1
            full((hidden, hidden)),    # w2
            full((1, hidden)),         # b2
            full((hidden, att_h)),     # a1
            full((1, att_h)),          # ab1
            full((1, att_h)),          # a2 diff
            full((1, 1)),              # ab2 diff
            full((hidden, hidden)),    # opw
            full((1, hidden)),         # opb
        ],
        out_specs=pl.BlockSpec((prows, pack * hidden), lambda i: (i, 0)),
    )

    packed = pl.pallas_call(
        _nerf_dino_fusion_kernel,
        out_shape=jax.ShapeDtypeStruct((padded_N // pack, pack * hidden),
                                       jnp.float32),
        grid_spec=grid_spec,
        compiler_params=pltpu.CompilerParams(
            dimension_semantics=("parallel",)),
    )(
        x,
        w1p_pad, w1d_pad, params["b1"],
        params["w2"], params["b2"],
        params["a1"], params["ab1"],
        a2d, ab2d,
        params["opw"], params["opb"],
    )

    # Undo the per-tile lane packing: packed block row j, lane-group c holds
    # tile row c*prows + j.
    out = packed.reshape(num_tiles, prows, pack, hidden)
    out = jnp.transpose(out, (0, 2, 1, 3)).reshape(padded_N, hidden)
    return out[:N] if padded_N != N else out


# ------------------------------------------------------------- param init ----
def init_params(key, pos_dim, dino_dim, hidden):
    att_h = hidden // 4
    ks = jax.random.split(key, 12)

    def lin(k, fan_in, fan_out):
        bound = 1.0 / jnp.sqrt(fan_in)
        return jax.random.uniform(k, (fan_in, fan_out), jnp.float32, -bound, bound)

    def bias(k, fan_in, fan_out):
        bound = 1.0 / jnp.sqrt(fan_in)
        return jax.random.uniform(k, (1, fan_out), jnp.float32, -bound, bound)

    in1 = pos_dim + dino_dim
    w1 = lin(ks[0], in1, hidden)
    return {
        "w1p": w1[:pos_dim, :],           # split of fusion layer-1 weight
        "w1d": w1[pos_dim:, :],
        "b1": bias(ks[1], in1, hidden),
        "w2": lin(ks[2], hidden, hidden),
        "b2": bias(ks[3], hidden, hidden),
        "a1": lin(ks[4], hidden, att_h),
        "ab1": bias(ks[5], hidden, att_h),
        "a2": lin(ks[6], att_h, 2),
        "ab2": bias(ks[7], att_h, 2),
        "opw": lin(ks[8], hidden, hidden),
        "opb": bias(ks[9], hidden, hidden),
    }


# --------------------------------------------------------- pure-JAX reference
def reference(pos, dino, p):
    def fusion(x):
        w1 = jnp.concatenate([p["w1p"], p["w1d"]], axis=0)
        h = jnp.maximum(x @ w1 + p["b1"], 0.0)
        return jnp.maximum(h @ p["w2"] + p["b2"], 0.0)

    fused = fusion(jnp.concatenate([pos, dino], axis=-1))
    a_h = jnp.maximum(fused @ p["a1"] + p["ab1"], 0.0)
    w = jax.nn.softmax(a_h @ p["a2"] + p["ab2"], axis=-1)
    final = fusion(jnp.concatenate([pos * w[:, 0:1], dino * w[:, 1:2]], axis=-1))
    return final @ p["opw"] + p["opb"]


# -------------------------------------------------------------------- main ---
if __name__ == "__main__":
    pos_dim, dino_dim, hidden = 16, 24, 32

    key = jax.random.PRNGKey(0)
    k_pos, k_dino, k_param = jax.random.split(key, 3)
    params = init_params(k_param, pos_dim, dino_dim, hidden)

    # Tolerance is slightly looser than f32 exact because the attention gate
    # uses the EUP approximate reciprocal (pl.reciprocal(..., approx=True)).
    ATOL, RTOL = 1e-3, 1e-3

    # Case 1: small, evenly tiled N.
    N = 64
    pos_encoding = jax.random.normal(k_pos, (N, pos_dim), jnp.float32)
    dino_features = jax.random.normal(k_dino, (N, dino_dim), jnp.float32)
    out = jax.block_until_ready(
        nerf_dino_fusion(pos_encoding, dino_features, params))
    ref = reference(pos_encoding, dino_features, params)
    assert out.shape == (N, hidden)
    assert jnp.allclose(out, ref, atol=ATOL, rtol=RTOL), "mismatch vs reference (N=64)"

    # Case 2: uneven N (exercises padding + multi-tile grid).
    N2 = 100
    pos2 = jax.random.normal(jax.random.PRNGKey(1), (N2, pos_dim), jnp.float32)
    dino2 = jax.random.normal(jax.random.PRNGKey(2), (N2, dino_dim), jnp.float32)
    out2 = jax.block_until_ready(nerf_dino_fusion(pos2, dino2, params))
    ref2 = reference(pos2, dino2, params)
    assert out2.shape == (N2, hidden)
    assert jnp.allclose(out2, ref2, atol=ATOL, rtol=RTOL), "mismatch vs reference (N=100)"

    print("KERNEL_OK")
</pallas_src>

<mosaic_0001>
module attributes {stable_mosaic.version = 11 : i64} {
  func.func @_nerf_dino_fusion_kernel(%arg0: i32, %arg1: memref<32x40xf32, #tpu.memory_space<vmem>>, %arg2: memref<40x32xf32, #tpu.memory_space<vmem>>, %arg3: memref<40x32xf32, #tpu.memory_space<vmem>>, %arg4: memref<1x32xf32, #tpu.memory_space<vmem>>, %arg5: memref<32x32xf32, #tpu.memory_space<vmem>>, %arg6: memref<1x32xf32, #tpu.memory_space<vmem>>, %arg7: memref<32x8xf32, #tpu.memory_space<vmem>>, %arg8: memref<1x8xf32, #tpu.memory_space<vmem>>, %arg9: memref<1x8xf32, #tpu.memory_space<vmem>>, %arg10: memref<1x1xf32, #tpu.memory_space<vmem>>, %arg11: memref<32x32xf32, #tpu.memory_space<vmem>>, %arg12: memref<1x32xf32, #tpu.memory_space<vmem>>, %arg13: memref<8x128xf32, #tpu.memory_space<vmem>>) attributes {dimension_semantics = [#tpu.dimension_semantics<parallel>], iteration_bounds = array<i64: 2>, scalar_prefetch = 0 : i64, scratch_operands = 0 : i64, tpu.core_type = #tpu.core_type<tc>, window_params = [{transform_indices = @transform_0, window_bounds = array<i64: 32, 40>}, {pipeline_mode = #tpu.pipeline_mode<synchronous>, transform_indices = @transform_1, window_bounds = array<i64: 40, 32>}, {pipeline_mode = #tpu.pipeline_mode<synchronous>, transform_indices = @transform_2, window_bounds = array<i64: 40, 32>}, {pipeline_mode = #tpu.pipeline_mode<synchronous>, transform_indices = @transform_3, window_bounds = array<i64: 1, 32>}, {pipeline_mode = #tpu.pipeline_mode<synchronous>, transform_indices = @transform_4, window_bounds = array<i64: 32, 32>}, {pipeline_mode = #tpu.pipeline_mode<synchronous>, transform_indices = @transform_5, window_bounds = array<i64: 1, 32>}, {pipeline_mode = #tpu.pipeline_mode<synchronous>, transform_indices = @transform_6, window_bounds = array<i64: 32, 8>}, {pipeline_mode = #tpu.pipeline_mode<synchronous>, transform_indices = @transform_7, window_bounds = array<i64: 1, 8>}, {pipeline_mode = #tpu.pipeline_mode<synchronous>, transform_indices = @transform_8, window_bounds = array<i64: 1, 8>}, {pipeline_mode = #tpu.pipeline_mode<synchronous>, transform_indices = @transform_9, window_bounds = array<i64: 1, 1>}, {pipeline_mode = #tpu.pipeline_mode<synchronous>, transform_indices = @transform_10, window_bounds = array<i64: 32, 32>}, {pipeline_mode = #tpu.pipeline_mode<synchronous>, transform_indices = @transform_11, window_bounds = array<i64: 1, 32>}, {transform_indices = @transform_12, window_bounds = array<i64: 8, 128>}]} {
    %c0 = arith.constant 0 : index
    %c0_0 = arith.constant 0 : index
    %0 = vector.load %arg1[%c0, %c0_0] : memref<32x40xf32, #tpu.memory_space<vmem>>, vector<32x40xf32>
    %c0_1 = arith.constant 0 : index
    %c0_2 = arith.constant 0 : index
    %1 = vector.load %arg4[%c0_1, %c0_2] : memref<1x32xf32, #tpu.memory_space<vmem>>, vector<1x32xf32>
    %c0_3 = arith.constant 0 : index
    %c0_4 = arith.constant 0 : index
    %2 = vector.load %arg6[%c0_3, %c0_4] : memref<1x32xf32, #tpu.memory_space<vmem>>, vector<1x32xf32>
    %c0_5 = arith.constant 0 : index
    %c0_6 = arith.constant 0 : index
    %3 = vector.load %arg2[%c0_5, %c0_6] : memref<40x32xf32, #tpu.memory_space<vmem>>, vector<40x32xf32>
    %cst = arith.constant dense<0.000000e+00> : vector<32x32xf32>
    %4 = tpu.matmul %0, %3, %cst {dimension_numbers = #tpu.dot_dimension_numbers<[1], [0], [0], [1], [0, 0, 1, 1], [], []>} : vector<32x40xf32>, vector<40x32xf32>, vector<32x32xf32> -> vector<32x32xf32>
    %c0_7 = arith.constant 0 : index
    %c0_8 = arith.constant 0 : index
    %5 = vector.load %arg3[%c0_7, %c0_8] : memref<40x32xf32, #tpu.memory_space<vmem>>, vector<40x32xf32>
    %cst_9 = arith.constant dense<0.000000e+00> : vector<32x32xf32>
    %6 = tpu.matmul %0, %5, %cst_9 {dimension_numbers = #tpu.dot_dimension_numbers<[1], [0], [0], [1], [0, 0, 1, 1], [], []>} : vector<32x40xf32>, vector<40x32xf32>, vector<32x32xf32> -> vector<32x32xf32>
    %7 = arith.addf %4, %6 : vector<32x32xf32>
    %8 = vector.broadcast %1 : vector<1x32xf32> to vector<32x32xf32>
    %9 = arith.addf %7, %8 : vector<32x32xf32>
    %cst_10 = arith.constant 0.000000e+00 : f32
    %10 = vector.broadcast %cst_10 : f32 to vector<32x32xf32>
    %11 = arith.maximumf %9, %10 : vector<32x32xf32>
    %c0_11 = arith.constant 0 : index
    %c0_12 = arith.constant 0 : index
    %12 = vector.load %arg5[%c0_11, %c0_12] : memref<32x32xf32, #tpu.memory_space<vmem>>, vector<32x32xf32>
    %cst_13 = arith.constant dense<0.000000e+00> : vector<32x32xf32>
    %13 = tpu.matmul %11, %12, %cst_13 {dimension_numbers = #tpu.dot_dimension_numbers<[1], [0], [0], [1], [0, 0, 1, 1], [], []>} : vector<32x32xf32>, vector<32x32xf32>, vector<32x32xf32> -> vector<32x32xf32>
    %14 = vector.broadcast %2 : vector<1x32xf32> to vector<32x32xf32>
    %15 = arith.addf %13, %14 : vector<32x32xf32>
    %cst_14 = arith.constant 0.000000e+00 : f32
    %16 = vector.broadcast %cst_14 : f32 to vector<32x32xf32>
    %17 = arith.maximumf %15, %16 : vector<32x32xf32>
    %c0_15 = arith.constant 0 : index
    %c0_16 = arith.constant 0 : index
    %18 = vector.load %arg7[%c0_15, %c0_16] : memref<32x8xf32, #tpu.memory_space<vmem>>, vector<32x8xf32>
    %cst_17 = arith.constant dense<0.000000e+00> : vector<32x8xf32>
    %19 = tpu.matmul %17, %18, %cst_17 {dimension_numbers = #tpu.dot_dimension_numbers<[1], [0], [0], [1], [0, 0, 1, 1], [], []>} : vector<32x32xf32>, vector<32x8xf32>, vector<32x8xf32> -> vector<32x8xf32>
    %c0_18 = arith.constant 0 : index
    %c0_19 = arith.constant 0 : index
    %20 = vector.load %arg8[%c0_18, %c0_19] : memref<1x8xf32, #tpu.memory_space<vmem>>, vector<1x8xf32>
    %21 = vector.broadcast %20 : vector<1x8xf32> to vector<32x8xf32>
    %22 = arith.addf %19, %21 : vector<32x8xf32>
    %cst_20 = arith.constant 0.000000e+00 : f32
    %23 = vector.broadcast %cst_20 : f32 to vector<32x8xf32>
    %24 = arith.maximumf %22, %23 : vector<32x8xf32>
    %c0_21 = arith.constant 0 : index
    %c0_22 = arith.constant 0 : index
    %25 = vector.load %arg9[%c0_21, %c0_22] : memref<1x8xf32, #tpu.memory_space<vmem>>, vector<1x8xf32>
    %26 = vector.broadcast %25 : vector<1x8xf32> to vector<32x8xf32>
    %27 = arith.mulf %24, %26 : vector<32x8xf32>
    %cst_23 = arith.constant dense<0.000000e+00> : vector<32xf32>
    %28 = vector.multi_reduction <add>, %27, %cst_23 [1] : vector<32x8xf32> to vector<32xf32>
    %29 = vector.shape_cast %28 : vector<32xf32> to vector<32x1xf32>
    %c0_24 = arith.constant 0 : index
    %c0_25 = arith.constant 0 : index
    %30 = vector.load %arg10[%c0_24, %c0_25] : memref<1x1xf32, #tpu.memory_space<vmem>>, vector<1x1xf32>
    %31 = vector.broadcast %30 : vector<1x1xf32> to vector<32x1xf32>
    %32 = arith.addf %29, %31 : vector<32x1xf32>
    %cst_26 = arith.constant 0.000000e+00 : f32
    %33 = vector.broadcast %cst_26 : f32 to vector<32x1xf32>
    %34 = arith.subf %33, %32 : vector<32x1xf32>
    %35 = math.exp %34 : vector<32x1xf32>
    %cst_27 = arith.constant 1.000000e+00 : f32
    %36 = vector.broadcast %cst_27 : f32 to vector<32x1xf32>
    %37 = arith.addf %36, %35 : vector<32x1xf32>
    %38 = tpu.reciprocal %37 {approx = true} : vector<32x1xf32> -> vector<32x1xf32>
    %cst_28 = arith.constant 1.000000e+00 : f32
    %39 = vector.broadcast %cst_28 : f32 to vector<32x1xf32>
    %40 = arith.subf %39, %38 : vector<32x1xf32>
    %41 = vector.broadcast %38 : vector<32x1xf32> to vector<32x32xf32>
    %42 = arith.mulf %41, %4 : vector<32x32xf32>
    %43 = vector.broadcast %40 : vector<32x1xf32> to vector<32x32xf32>
    %44 = arith.mulf %43, %6 : vector<32x32xf32>
    %45 = arith.addf %42, %44 : vector<32x32xf32>
    %46 = vector.broadcast %1 : vector<1x32xf32> to vector<32x32xf32>
    %47 = arith.addf %45, %46 : vector<32x32xf32>
    %cst_29 = arith.constant 0.000000e+00 : f32
    %48 = vector.broadcast %cst_29 : f32 to vector<32x32xf32>
    %49 = arith.maximumf %47, %48 : vector<32x32xf32>
    %c0_30 = arith.constant 0 : index
    %c0_31 = arith.constant 0 : index
    %50 = vector.load %arg5[%c0_30, %c0_31] : memref<32x32xf32, #tpu.memory_space<vmem>>, vector<32x32xf32>
    %cst_32 = arith.constant dense<0.000000e+00> : vector<32x32xf32>
    %51 = tpu.matmul %49, %50, %cst_32 {dimension_numbers = #tpu.dot_dimension_numbers<[1], [0], [0], [1], [0, 0, 1, 1], [], []>} : vector<32x32xf32>, vector<32x32xf32>, vector<32x32xf32> -> vector<32x32xf32>
    %52 = vector.broadcast %2 : vector<1x32xf32> to vector<32x32xf32>
    %53 = arith.addf %51, %52 : vector<32x32xf32>
    %cst_33 = arith.constant 0.000000e+00 : f32
    %54 = vector.broadcast %cst_33 : f32 to vector<32x32xf32>
    %55 = arith.maximumf %53, %54 : vector<32x32xf32>
    %c0_34 = arith.constant 0 : index
    %c0_35 = arith.constant 0 : index
    %56 = vector.load %arg11[%c0_34, %c0_35] : memref<32x32xf32, #tpu.memory_space<vmem>>, vector<32x32xf32>
    %cst_36 = arith.constant dense<0.000000e+00> : vector<32x32xf32>
    %57 = tpu.matmul %55, %56, %cst_36 {dimension_numbers = #tpu.dot_dimension_numbers<[1], [0], [0], [1], [0, 0, 1, 1], [], []>} : vector<32x32xf32>, vector<32x32xf32>, vector<32x32xf32> -> vector<32x32xf32>
    %c0_37 = arith.constant 0 : index
    %c0_38 = arith.constant 0 : index
    %58 = vector.load %arg12[%c0_37, %c0_38] : memref<1x32xf32, #tpu.memory_space<vmem>>, vector<1x32xf32>
    %59 = vector.broadcast %58 : vector<1x32xf32> to vector<32x32xf32>
    %60 = arith.addf %57, %59 : vector<32x32xf32>
    %61 = vector.extract_strided_slice %60 {offsets = [0, 0], sizes = [8, 32], strides = [1, 1]} : vector<32x32xf32> to vector<8x32xf32>
    %62 = vector.extract_strided_slice %60 {offsets = [8, 0], sizes = [8, 32], strides = [1, 1]} : vector<32x32xf32> to vector<8x32xf32>
    %63 = vector.extract_strided_slice %60 {offsets = [16, 0], sizes = [8, 32], strides = [1, 1]} : vector<32x32xf32> to vector<8x32xf32>
    %64 = vector.extract_strided_slice %60 {offsets = [24, 0], sizes = [8, 32], strides = [1, 1]} : vector<32x32xf32> to vector<8x32xf32>
    %65 = tpu.concatenate %61, %62, %63, %64 in 1 : vector<8x32xf32>, vector<8x32xf32>, vector<8x32xf32>, vector<8x32xf32> -> vector<8x128xf32>
    %c0_39 = arith.constant 0 : index
    %c0_40 = arith.constant 0 : index
    %66 = vector.load %arg13[%c0_39, %c0_40] : memref<8x128xf32, #tpu.memory_space<vmem>>, vector<8x128xf32>
    tpu.vector_store %arg13[%c0_39, %c0_40], %65 {strides = array<i32>} : memref<8x128xf32, #tpu.memory_space<vmem>>, vector<8x128xf32>,
    return
  }
  func.func @transform_0(%arg0: i32) -> (i32, i32) {
    %c0_i32 = arith.constant 0 : i32
    %c0_i32_0 = arith.constant 0 : i32
    return %arg0, %c0_i32 : i32, i32
  }
  func.func @transform_1(%arg0: i32) -> (i32, i32) {
    %c0_i32 = arith.constant 0 : i32
    %c0_i32_0 = arith.constant 0 : i32
    %c0_i32_1 = arith.constant 0 : i32
    return %c0_i32, %c0_i32_0 : i32, i32
  }
  func.func @transform_2(%arg0: i32) -> (i32, i32) {
    %c0_i32 = arith.constant 0 : i32
    %c0_i32_0 = arith.constant 0 : i32
    %c0_i32_1 = arith.constant 0 : i32
    return %c0_i32, %c0_i32_0 : i32, i32
  }
  func.func @transform_3(%arg0: i32) -> (i32, i32) {
    %c0_i32 = arith.constant 0 : i32
    %c0_i32_0 = arith.constant 0 : i32
    %c0_i32_1 = arith.constant 0 : i32
    return %c0_i32, %c0_i32_0 : i32, i32
  }
  func.func @transform_4(%arg0: i32) -> (i32, i32) {
    %c0_i32 = arith.constant 0 : i32
    %c0_i32_0 = arith.constant 0 : i32
    %c0_i32_1 = arith.constant 0 : i32
    return %c0_i32, %c0_i32_0 : i32, i32
  }
  func.func @transform_5(%arg0: i32) -> (i32, i32) {
    %c0_i32 = arith.constant 0 : i32
    %c0_i32_0 = arith.constant 0 : i32
    %c0_i32_1 = arith.constant 0 : i32
    return %c0_i32, %c0_i32_0 : i32, i32
  }
  func.func @transform_6(%arg0: i32) -> (i32, i32) {
    %c0_i32 = arith.constant 0 : i32
    %c0_i32_0 = arith.constant 0 : i32
    %c0_i32_1 = arith.constant 0 : i32
    return %c0_i32, %c0_i32_0 : i32, i32
  }
  func.func @transform_7(%arg0: i32) -> (i32, i32) {
    %c0_i32 = arith.constant 0 : i32
    %c0_i32_0 = arith.constant 0 : i32
    %c0_i32_1 = arith.constant 0 : i32
    return %c0_i32, %c0_i32_0 : i32, i32
  }
  func.func @transform_8(%arg0: i32) -> (i32, i32) {
    %c0_i32 = arith.constant 0 : i32
    %c0_i32_0 = arith.constant 0 : i32
    %c0_i32_1 = arith.constant 0 : i32
    return %c0_i32, %c0_i32_0 : i32, i32
  }
  func.func @transform_9(%arg0: i32) -> (i32, i32) {
    %c0_i32 = arith.constant 0 : i32
    %c0_i32_0 = arith.constant 0 : i32
    %c0_i32_1 = arith.constant 0 : i32
    return %c0_i32, %c0_i32_0 : i32, i32
  }
  func.func @transform_10(%arg0: i32) -> (i32, i32) {
    %c0_i32 = arith.constant 0 : i32
    %c0_i32_0 = arith.constant 0 : i32
    %c0_i32_1 = arith.constant 0 : i32
    return %c0_i32, %c0_i32_0 : i32, i32
  }
  func.func @transform_11(%arg0: i32) -> (i32, i32) {
    %c0_i32 = arith.constant 0 : i32
    %c0_i32_0 = arith.constant 0 : i32
    %c0_i32_1 = arith.constant 0 : i32
    return %c0_i32, %c0_i32_0 : i32, i32
  }
  func.func @transform_12(%arg0: i32) -> (i32, i32) {
    %c0_i32 = arith.constant 0 : i32
    %c0_i32_0 = arith.constant 0 : i32
    return %arg0, %c0_i32 : i32, i32
  }
}

</mosaic_0001>

<bundles_post_ra>
// kernel: tpu_custom_call.1
= control target key start
LH: loop header
LB: loop body
LE: loop exit
PB: predicated region body
PF: predicated region fallthrough
CT: control target
= control target key end

     0   :  { %s1901_s0 = inlined_call_operand.vmem [shape: f32[64,40], index: 0, kind: input, shape index: {}]   ;;  %s1902_s1 = inlined_call_operand.vmem [shape: f32[40,32], index: 1, kind: input, shape index: {}]   ;;  %s1903_s2 = inlined_call_operand.vmem [shape: f32[40,32], index: 2, kind: input, shape index: {}]   ;;  %s1904_s3 = inlined_call_operand.vmem [shape: f32[1,32], index: 3, kind: input, shape index: {}]   ;;  %s1905_s4 = inlined_call_operand.vmem [shape: f32[32,32], index: 4, kind: input, shape index: {}]   ;;  %s1906_s5 = inlined_call_operand.vmem [shape: f32[1,32], index: 5, kind: input, shape index: {}]   ;;  %s1907_s6 = inlined_call_operand.vmem [shape: f32[32,8], index: 6, kind: input, shape index: {}]   ;;  %s1908_s7 = inlined_call_operand.vmem [shape: f32[1,8], index: 7, kind: input, shape index: {}]   ;;  %s1909_s8 = inlined_call_operand.vmem [shape: f32[1,8], index: 8, kind: input, shape index: {}]   ;;  %s1910_s9 = inlined_call_operand.<no memory space> [shape: f32[1,1], index: 9, kind: input, shape index: {}]   ;;  %s1911_s10 = inlined_call_operand.vmem [shape: f32[32,32], index: 10, kind: input, shape index: {}]   ;;  %s1912_s11 = inlined_call_operand.vmem [shape: f32[1,32], index: 11, kind: input, shape index: {}]   ;;  %s1913_s12 = inlined_call_operand.hbm [shape: f32[16,128], index: 12, kind: output, shape index: {}]  }
   0x1   :  { %v17_v0 = vstv %s1910_s9 }
   0x2   :  { %18 = vst [vmem:[#allocation2] sm:$0x1] %v17_v0 }
   0x3   :  { %19 = vsyncpa [#allocation4], 0 }
   0x4   :  { %21 = vsyncpa [#allocation4 + $0x1], 0  ;;  %s1651_s23 = smov 0   ;;  %s1653_s24 = smov 0  }
   0x5   :  { %s1655_s25 = smov 0   ;;  %s1657_s26 = smov 0  }
   0x6 LB: > { %s1672_s9 = sadd.s32 4294967295, %s1576_s26   ;;  %s1276_s27 = sadd.s32 4294967294, %s1576_s26   ;;  %s1576_s26 = sphi %s1657_s26, %s1921_s26   ;;  %s1572_s25 = sphi %s1655_s25, %s1920_s25   ;;  %s1568_s24 = sphi %s1653_s24, %s1919_s24   ;;  %s1564_s23 = sphi %s1651_s23, %s1918_s23  }
   0x7   : > { %s1676_s28 = sadd.s32 1, %s1576_s26   ;;  %s291_s29 = sadd.s32 1, %s1572_s25 }
   0x8   : > { %s288_s30 = ssub.s32 %s1576_s26, %s1676_s28  ;;  %p301_p0 = scmp.ne.s32.totalorder %s1572_s25, %s1568_s24 }
   0x9   : > { %p289_p1 = scmp.eq.s32.totalorder %s288_s30, 0  ;;  %p302_p2 = scmp.eq.s32.totalorder %s1672_s9, 1 }
   0xa   : > { %p307_p3 = scmp.ne.s32.totalorder %s1568_s24, %s1564_s23  ;;  %p308_p4 = scmp.eq.s32.totalorder %s1276_s27, 1 }
   0xb   : > { %s1687_s13 = scalar_select %p289_p1, %s1572_s25, %s291_s29  }
   0xc   : > { %p1689_p5 = por %p302_p2, %p301_p0  ;;  %p1693_p6 = por %p308_p4, %p307_p3 }
   0xd   : > { %1914 = sst [smem:[#allocation6_spill]] %s1687_s13  ;;  %p1279_p7 = scmp.ge.s32.totalorder %s1576_s26, 1 }
   0xe   : > { %p368_p8 = scmp.lt.s32.totalorder %s1576_s26, 3 }
  0x10   : > { %p369_p9 = pnand %p1279_p7, %p368_p8 }
  0x11   : > { %s1281_s22 = sshll.u32 (!%p369_p9), %s1672_s9, 2  ;;  %s1580_s21 = smov (!%p369_p9), 96  }
  0x12   : > { %372 = sbr.rel (%p369_p9) target bundleno = 1501 (0x5dd), region = 68  ;;  %p411_p10 = scmp.lt.s32.totalorder (!%p369_p9), %s1281_s22, 7 }
  0x13   : > { %s1581_s27 = smov (!%p369_p9), 64   ;;  %s1314_s16 = sshll.u32 (!%p369_p9), %s1672_s9, 7 }
  0x14   : > { %s1866_s13 = scalar_lea.hbm (!%p369_p9), %s1913_s12, %s1314_s16  ;;  %s1582_s9 = smov (!%p369_p9), [#allocation3]  }
  0x17   : > { %v426_v1 = vld [vmem:[%s1902_s1 + $0x20] sm:$0xff]  ;;  %v425_v3 = vld [vmem:[%s1902_s1 + $0x18] sm:$0xff]  ;;  %v424_v5 = vld [vmem:[%s1902_s1 + $0x10] sm:$0xff]  ;;  %s1923_s22 = smov (!%p411_p10, %s1281_s22), 7  ;;  %vm427_vm0 = vcmask 326656   ;;  %vm643_vm1 = vcmask 261120  }
  0x18   : > { %v529_v2 = vld [vmem:[%s1903_s2 + $0x20] sm:$0xff]  ;;  %1367 = vmatprep.subr.mxu0 %v426_v1  ;;  %v528_v4 = vld [vmem:[%s1903_s2 + $0x18] sm:$0xff]  ;;  %v527_v6 = vld [vmem:[%s1903_s2 + $0x10] sm:$0xff]  ;;  %s1282_s29 = sshll.u32 %s1923_s22, 3  ;;  %vm868_vm2 = vcmask 64512   ;;  %s1579_s22 = smov 32  }
  0x19   : > { %1383 = vmatprep.subr.mxu1 %v529_v2  ;;  %1368 = vmatpush3.msra.mxu0 %v426_v1  ;;  %v423_v7 = vld [vmem:[%s1902_s1 + $0x8] sm:$0xff]  ;;  %v422_v9 = vld [vmem:[%s1902_s1] sm:$0xff]  ;;  %s414_s20 = scalar_lea.vmem %s1901_s0, %s1282_s29  ;;  %v636_v15 = vld [vmem:[%s1905_s4 + $0x18] sm:$0xff]  ;;  %s407_s29 = sand.u32 1, %s1568_s24   ;;  %vm1198_vm3 = vcmask 523264   ;;  %vm1200_vm4 = vcmask 785408  }
  0x1a   : > { %1384 = vmatpush3.msra.mxu1 %v529_v2  ;;  %1369 = vmatprep.subr.mxu0 %v425_v3  ;;  %v526_v8 = vld [vmem:[%s1903_s2 + $0x8] sm:$0xff]  ;;  %v525_v10 = vld [vmem:[%s1903_s2] sm:$0xff]  ;;  %v418_v13 = vld [vmem:[%s414_s20 + $0x10] sm:$0xff]  ;;  %s1280_s30 = sshll.u32 %s407_s29, 3 }
  0x1b   : > { %1385 = vmatprep.subr.mxu1 %v528_v4  ;;  %1370 = vmatpush3.msra.mxu0 %v425_v3  ;;  %v416_v11 = vld [vmem:[%s414_s20] sm:$0xff]  ;;  %v417_v12 = vld [vmem:[%s414_s20 + $0x8] sm:$0xff]  ;;  %v419_v14 = vld [vmem:[%s414_s20 + $0x18] sm:$0xff]  ;;  %s409_s17 = scalar_lea.vmem [#allocation3], %s1280_s30 }
  0x1c   : > { %1386 = vmatpush3.msra.mxu1 %v528_v4  ;;  %1371 = vmatprep.subr.mxu0 %v424_v5  ;;  %v635_v16 = vld [vmem:[%s1905_s4 + $0x10] sm:$0xff]  ;;  %v634_v17 = vld [vmem:[%s1905_s4 + $0x8] sm:$0xff]  ;;  %v633_v18 = vld [vmem:[%s1905_s4] sm:$0xff]  ;;  %s1217_s18 = sshll.u32 %s409_s17, 4  ;;  %s1218_s18 = int_to_ptr.vmem [resolvable:$true] %s1217_s18 }
  0x1d   : > { %1387 = vmatprep.subr.mxu1 %v527_v6  ;;  %1372 = vmatpush3.msra.mxu0 %v424_v5  ;;  %v748_v19 = vld [vmem:[%s1907_s6 + $0x18] sm:$0xff]  ;;  %v1763_v22 = vld [vmem:[%s1904_s3] ss:$0 sm:$0xff]  ;;  %v747_v41 = vld [vmem:[%s1907_s6 + $0x10] sm:$0xff] }
  0x1e   : > { %1388 = vmatpush3.msra.mxu1 %v527_v6  ;;  %1373 = vmatprep.subr.mxu0 %v423_v7  ;;  %v746_v42 = vld [vmem:[%s1907_s6 + $0x8] sm:$0xff]  ;;  %v745_v43 = vld [vmem:[%s1907_s6] sm:$0xff] }
  0x1f   : > { %1389 = vmatprep.subr.mxu1 %v526_v8  ;;  %1374 = vmatpush3.msra.mxu0 %v423_v7  ;;  %v1805_v44 = vld [vmem:[%s1906_s5] ss:$0 sm:$0xff] }
  0x20   : > { %1390 = vmatpush3.msra.mxu1 %v526_v8  ;;  %1375 = vmatprep.subr.mxu0 %v422_v9  ;;  %v1297_v57 = vld [vmem:[%s1908_s7] ss:$0 sm:$0xff] }
  0x21   : > { %1391 = vmatprep.subr.mxu1 %v525_v10  ;;  %1376 = vmatpush3.msra.mxu0 %v422_v9  ;;  %v1302_v3 = vld [vmem:[%s1909_s8] ss:$0 sm:$0xff] }
  0x22   : > { %1377 = vmatprep.mubr.msk.f32.mxu0 %vm427_vm0, %v416_v11  ;;  %1392 = vmatpush3.msra.mxu1 %v525_v10 }
  0x23   : > { %1393 = vmatprep.mubr.msk.f32.mxu1 %vm427_vm0, %v416_v11  ;;  %1378 = vmatmul.mubr.msk.f32.vlgmr.msra.gmra.mxu0 %vm427_vm0, %v417_v12 }
  0x24   : > { %1394 = vmatmul.mubr.msk.f32.vlgmr.msra.gmra.mxu1 %vm427_vm0, %v417_v12  ;;  %1380 = vmatprep.mubr.msk.f32.mxu0 %vm427_vm0, %v418_v13 }
  0x25   : > { %1396 = vmatprep.mubr.msk.f32.mxu1 %vm427_vm0, %v418_v13  ;;  %1399 = vmatprep.subr.mxu0 %v636_v15 }
  0x26   : > { %1400 = vmatpush3.msra.mxu0 %v636_v15  ;;  %1413 = vmatprep.subr.mxu1 %v748_v19 }
  0x27   : > { %1381 = vmatmul.mubr.msk.f32.gmra.mxu0 %vm427_vm0, %v419_v14  ;;  %1401 = vmatprep.subr.mxu0 %v635_v16 }
  0x28   : > { %1397 = vmatmul.mubr.msk.f32.gmra.mxu1 %vm427_vm0, %v419_v14  ;;  %1402 = vmatpush3.msra.mxu0 %v635_v16 }
  0x29   : > { %1403 = vmatprep.subr.mxu0 %v634_v17  ;;  %1414 = vmatpush3.msra.mxu1 %v748_v19 }
  0x2a   : > { %1404 = vmatpush3.msra.mxu0 %v634_v17  ;;  %1415 = vmatprep.subr.mxu1 %v747_v41 }
  0x2b   : > { %1405 = vmatprep.subr.mxu0 %v633_v18  ;;  %1416 = vmatpush3.msra.mxu1 %v747_v41 }
  0x2c   : > { %1406 = vmatpush3.msra.mxu0 %v633_v18  ;;  %1417 = vmatprep.subr.mxu1 %v746_v42 }
  0x2d   : > { %1427 = vmatprep.subr.mxu0 %v636_v15  ;;  %1418 = vmatpush3.msra.mxu1 %v746_v42 }
  0x2e   : > { %1419 = vmatprep.subr.mxu1 %v745_v43 }
  0x2f   : > { %1420 = vmatpush3.msra.mxu1 %v745_v43 }
  0xe3   : > { %v1756_v20 = vpop.f32.mrf.mxu0 }
  0xe4   : > { %v1758_v21 = vpop.f32.mrf.mxu1 }
  0xe5   : > { %v616_v23 = vadd.f32 %v1758_v21, %v1756_v20  ;;  %v1767_v24 = vpop.f32.mrf.mxu0 }
  0xe6   : > { %v1769_v25 = vpop.f32.mrf.mxu1 }
  0xe7   : > { %v615_v26 = vadd.f32 %v1769_v25, %v1767_v24  ;;  %v626_v27 = vadd.f32 %v1763_v22, %v616_v23  ;;  %v1774_v28 = vpop.f32.mrf.mxu0 }
  0xe8   : > { %v1776_v29 = vpop.f32.mrf.mxu1 }
  0xe9   : > { %v625_v30 = vadd.f32 %v1763_v22, %v615_v26  ;;  %v618_v31 = vadd.f32 %v1776_v29, %v1774_v28  ;;  %v1781_v32 = vpop.f32.mrf.mxu0  ;;  %v630_v37 = vmax.f32 %v626_v27, 0.0 }
  0xea   : > { %v1783_v33 = vpop.f32.mrf.mxu1 }
  0xeb   : > { %v629_v34 = vmax.f32 %v625_v30, 0.0  ;;  %v628_v35 = vadd.f32 %v1763_v22, %v618_v31  ;;  %v617_v36 = vadd.f32 %v1783_v33, %v1781_v32 }
  0xed   : > { %v627_v38 = vadd.f32 %v1763_v22, %v617_v36  ;;  %1407 = vmatprep.mubr.msk.f32.mxu0 %vm643_vm1, %v629_v34  ;;  %v632_v39 = vmax.f32 %v628_v35, 0.0 }
  0xee   : > { %1408 = vmatmul.mubr.msk.f32.vlgmr.msra.gmra.mxu0 %vm643_vm1, %v630_v37 }
  0xef   : > { %v631_v40 = vmax.f32 %v627_v38, 0.0  ;;  %1428 = vmatpush3.msra.mxu0 %v636_v15  ;;  %v1578_v15 = vmov 0  }
  0xf0   : > { %1429 = vmatprep.subr.mxu0 %v635_v16  ;;  %1498 = vset.pattern.permute.xlu0 %v1578_v15 }
  0xf1   : > { %1410 = vmatprep.mubr.msk.f32.mxu0 %vm643_vm1, %v631_v40  ;;  %1430 = vmatpush3.msra.mxu0 %v635_v16  ;;  %v1303_v16 = vld [vmem:[#allocation2] ss:$0 sm:$0xff] }
  0xf2   : > { %1411 = vmatmul.mubr.msk.f32.gmra.mxu0 %vm643_vm1, %v632_v39  ;;  %1431 = vmatprep.subr.mxu0 %v634_v17 }
  0xf3   : > { %1432 = vmatpush3.msra.mxu0 %v634_v17  ;;  %1499 = vset.pattern.permute.xlu1 %v1578_v15 }
  0xf4   : > { %1433 = vmatprep.subr.mxu0 %v633_v18 }
  0xf5   : > { %1434 = vmatpush3.msra.mxu0 %v633_v18 }
 0x1ae   : > { %v1409_v45 = vpop.f32.mrf.mxu0 }
 0x1af   : > { %v728_v46 = vadd.f32 %v1409_v45, %v1805_v44 }
 0x1b0   : > { %v722_v47 = vpop.f32.mrf.mxu0 }
 0x1b1   : > { %v723_v48 = vadd.f32 %v1805_v44, %v722_v47  ;;  %v742_v52 = vmax.f32 %v728_v46, 0.0 }
 0x1b2   : > { %v1412_v49 = vpop.f32.mrf.mxu0 }
 0x1b3   : > { %v741_v50 = vmax.f32 %v723_v48, 0.0  ;;  %v738_v51 = vadd.f32 %v1412_v49, %v1805_v44 }
 0x1b4   : > { %v732_v53 = vpop.f32.mrf.mxu0 }
 0x1b5   : > { %v733_v54 = vadd.f32 %v1805_v44, %v732_v53  ;;  %1421 = vmatprep.mubr.msk.f32.mxu1 %vm643_vm1, %v741_v50  ;;  %v744_v55 = vmax.f32 %v738_v51, 0.0 }
 0x1b6   : > { %1422 = vmatmul.mubr.msk.f32.vlgmr.msra.gmra.mxu1 %vm643_vm1, %v742_v52 }
 0x1b7   : > { %v743_v56 = vmax.f32 %v733_v54, 0.0 }
 0x1b9   : > { %1424 = vmatprep.mubr.msk.f32.mxu1 %vm643_vm1, %v743_v56 }
 0x1ba   : > { %1425 = vmatmul.mubr.msk.f32.gmra.mxu1 %vm643_vm1, %v744_v55 }
 0x276   : > { %v1423_v58 = vpop.f32.mrf.mxu1 }
 0x277   : > { %v840_v59 = vadd.f32 %v1423_v58, %v1297_v57 }
 0x278   : > { %v834_v60 = vpop.f32.mrf.mxu1 }
 0x279   : > { %v835_v61 = vadd.f32 %v1297_v57, %v834_v60  ;;  %v854_v63 = vmax.f32 %v840_v59, 0.0 }
 0x27a   : > { %v1426_v62 = vpop.f32.mrf.mxu1 }
 0x27b   : > { %v853_v0 = vmax.f32 %v835_v61, 0.0  ;;  %v850_v1 = vadd.f32 %v1426_v62, %v1297_v57  ;;  %v865_v9 = vmul.f32 %v1302_v3, %v854_v63 }
 0x27c   : > { %v844_v2 = vpop.f32.mrf.mxu1 }
 0x27d   : > { %v845_v4 = vadd.f32 %v1297_v57, %v844_v2  ;;  %v864_v5 = vmul.f32 %v1302_v3, %v853_v0  ;;  %v856_v6 = vmax.f32 %v850_v1, 0.0  ;;  %v872_v11 = vsel %vm868_vm2, %v865_v9, 0.0 }
 0x27f   : > { %v855_v7 = vmax.f32 %v845_v4, 0.0  ;;  %v869_v8 = vsel %vm868_vm2, %v864_v5, 0.0  ;;  %v867_v13 = vmul.f32 %v1302_v3, %v856_v6 }
 0x280   : > { %870 = vadd.xlane.f32.xlu0 %v869_v8 }
 0x281   : > { %v866_v10 = vmul.f32 %v1302_v3, %v855_v7  ;;  %v878_v14 = vsel %vm868_vm2, %v867_v13, 0.0 }
 0x283   : > { %v875_v12 = vsel %vm868_vm2, %v866_v10, 0.0 }
 0x284   : > { %873 = vadd.xlane.f32.xlu0 %v872_v11  ;;  %876 = vadd.xlane.f32.xlu1 %v875_v12 }
 0x288   : > { %879 = vadd.xlane.f32.xlu1 %v878_v14 }
 0x309   : > { %v871_v17 = vpop.xlane.xlu0 %870 }
 0x30a   : > { %v888_v18 = vadd.f32 %v1303_v16, %v871_v17 }
 0x30c   : > { %v892_v19 = vsub.f32 0.0, %v888_v18 }
 0x30d   : > { %v874_v23 = vpop.xlane.xlu0 %873  ;;  %v877_v26 = vpop.xlane.xlu1 %876 }
 0x30e   : > { %v896_v27 = vmul.f32 1.442695, %v892_v19  ;;  %v889_v30 = vadd.f32 %v1303_v16, %v874_v23  ;;  %v890_v37 = vadd.f32 %v1303_v16, %v877_v26 }
 0x310   : > { %1500 = vpow2.f32 %v896_v27  ;;  %v893_v31 = vsub.f32 0.0, %v889_v30  ;;  %v894_v39 = vsub.f32 0.0, %v890_v37 }
 0x311   : > { %v880_v34 = vpop.xlane.xlu1 %879 }
 0x312   : > { %v898_v35 = vmul.f32 1.442695, %v893_v31  ;;  %v891_v36 = vadd.f32 %v1303_v16, %v880_v34  ;;  %v900_v41 = vmul.f32 1.442695, %v894_v39  ;;  %v1308_v39 = vld [vmem:[%s1912_s11] ss:$0 sm:$0xff] }
 0x314   : > { %1502 = vpow2.f32 %v898_v35  ;;  %v895_v38 = vsub.f32 0.0, %v891_v36 }
 0x316   : > { %v902_v40 = vmul.f32 1.442695, %v895_v38 }
 0x318   : > { %1504 = vpow2.f32 %v902_v40 }
 0x319   : > { %1506 = vpow2.f32 %v900_v41 }
 0x31d   : > { %v1501_v42 = vpop.eup %1500 }
 0x31e   : > { %v904_v43 = vadd.f32 1.0, %v1501_v42 }
 0x320   : > { %1508 = vrcp.f32 %v904_v43 }
 0x321   : > { %v1503_v45 = vpop.eup %1502 }
 0x322   : > { %v905_v46 = vadd.f32 1.0, %v1503_v45 }
 0x324   : > { %1510 = vrcp.f32 %v905_v46 }
 0x325   : > { %v1505_v47 = vpop.eup %1504 }
 0x326   : > { %v1507_v48 = vpop.eup %1506  ;;  %v907_v49 = vadd.f32 1.0, %v1505_v47 }
 0x327   : > { %v906_v51 = vadd.f32 1.0, %v1507_v48 }
 0x328   : > { %1512 = vrcp.f32 %v907_v49 }
 0x329   : > { %1514 = vrcp.f32 %v906_v51 }
 0x32d   : > { %v1509_v50 = vpop.eup %1508 }
 0x32e   : > { %918 = vperm.xlu0 %1498, %v1509_v50   ;;  %v912_v54 = vsub.f32 1.0, %v1509_v50 }
 0x331   : > { %v1511_v52 = vpop.eup %1510 }
 0x332   : > { %923 = vperm.xlu1 %1499, %v1511_v52   ;;  %v913_v53 = vsub.f32 1.0, %v1511_v52 }
 0x335   : > { %v1513_v55 = vpop.eup %1512 }
 0x336   : > { %947 = vperm.xlu1 %1499, %v913_v53   ;;  %v1515_v56 = vpop.eup %1514  ;;  %v915_v58 = vsub.f32 1.0, %v1513_v55 }
 0x337   : > { %v914_v57 = vsub.f32 1.0, %v1515_v56 }
 0x33a   : > { %942 = vperm.xlu1 %1499, %v912_v54  }
 0x33e   : > { %933 = vperm.xlu1 %1499, %v1513_v55  }
 0x342   : > { %928 = vperm.xlu1 %1499, %v1515_v56  }
 0x346   : > { %952 = vperm.xlu1 %1499, %v914_v57  }
 0x34a   : > { %957 = vperm.xlu1 %1499, %v915_v58  }
 0x3a9   : > { %v919_v62 = vpop.permute.xlu0 %918 }
 0x3aa   : > { %v936_v2 = vmul.f32 %v919_v62, %v1767_v24 }
 0x3ad   : > { %v924_v59 = vpop.permute.xlu1 %923 }
 0x3ae   : > { %v937_v63 = vmul.f32 %v1756_v20, %v924_v59 }
 0x3b1   : > { %v948_v60 = vpop.permute.xlu1 %947 }
 0x3b2   : > { %v961_v61 = vmul.f32 %v1758_v21, %v948_v60 }
 0x3b4   : > { %v965_v0 = vadd.f32 %v961_v61, %v937_v63 }
 0x3b5   : > { %v943_v1 = vpop.permute.xlu1 %942 }
 0x3b6   : > { %v960_v3 = vmul.f32 %v943_v1, %v1769_v25  ;;  %v969_v5 = vadd.f32 %v1763_v22, %v965_v0 }
 0x3b8   : > { %v964_v4 = vadd.f32 %v960_v3, %v936_v2  ;;  %v973_v9 = vmax.f32 %v969_v5, 0.0 }
 0x3b9   : > { %v934_v6 = vpop.permute.xlu1 %933 }
 0x3ba   : > { %v968_v7 = vadd.f32 %v1763_v22, %v964_v4  ;;  %v939_v12 = vmul.f32 %v1774_v28, %v934_v6  ;;  %v1079_v28 = vld [vmem:[%s1911_s10 + $0x10] sm:$0xff] }
 0x3bc   : > { %v972_v8 = vmax.f32 %v968_v7, 0.0 }
 0x3bd   : > { %v929_v10 = vpop.permute.xlu1 %928 }
 0x3be   : > { %1435 = vmatprep.mubr.msk.f32.mxu0 %vm643_vm1, %v972_v8  ;;  %v938_v21 = vmul.f32 %v929_v10, %v1781_v32  ;;  %v1080_v32 = vld [vmem:[%s1911_s10 + $0x18] sm:$0xff] }
 0x3bf   : > { %1436 = vmatmul.mubr.msk.f32.vlgmr.msra.gmra.mxu0 %vm643_vm1, %v973_v9  ;;  %1441 = vmatprep.subr.mxu1 %v1080_v32 }
 0x3c0   : > { %1442 = vmatpush3.msra.mxu1 %v1080_v32 }
 0x3c1   : > { %v953_v20 = vpop.permute.xlu1 %952  ;;  %1443 = vmatprep.subr.mxu1 %v1079_v28 }
 0x3c2   : > { %v962_v24 = vmul.f32 %v953_v20, %v1783_v33  ;;  %1444 = vmatpush3.msra.mxu1 %v1079_v28 }
 0x3c4   : > { %v966_v11 = vadd.f32 %v962_v24, %v938_v21 }
 0x3c5   : > { %v958_v25 = vpop.permute.xlu1 %957 }
 0x3c6   : > { %v970_v13 = vadd.f32 %v1763_v22, %v966_v11  ;;  %v963_v14 = vmul.f32 %v1776_v29, %v958_v25  ;;  %v1077_v29 = vld [vmem:[%s1911_s10] sm:$0xff] }
 0x3c8   : > { %v974_v15 = vmax.f32 %v970_v13, 0.0  ;;  %v967_v16 = vadd.f32 %v963_v14, %v939_v12 }
 0x3ca   : > { %v971_v17 = vadd.f32 %v1763_v22, %v967_v16  ;;  %1438 = vmatprep.mubr.msk.f32.mxu0 %vm643_vm1, %v974_v15  ;;  %v1078_v22 = vld [vmem:[%s1911_s10 + $0x8] sm:$0xff] }
 0x3cb   : > { %1445 = vmatprep.subr.mxu1 %v1078_v22 }
 0x3cc   : > { %v975_v18 = vmax.f32 %v971_v17, 0.0  ;;  %1446 = vmatpush3.msra.mxu1 %v1078_v22 }
 0x3cd   : > { %1447 = vmatprep.subr.mxu1 %v1077_v29 }
 0x3ce   : > { %1439 = vmatmul.mubr.msk.f32.gmra.mxu0 %vm643_vm1, %v975_v18  ;;  %1448 = vmatpush3.msra.mxu1 %v1077_v29 }
 0x47f   : > { %v1437_v33 = vpop.f32.mrf.mxu0 }
 0x480   : > { %v1060_v19 = vadd.f32 %v1437_v33, %v1805_v44 }
 0x481   : > { %v1054_v23 = vpop.f32.mrf.mxu0 }
 0x482   : > { %v1055_v26 = vadd.f32 %v1805_v44, %v1054_v23  ;;  %v1074_v30 = vmax.f32 %v1060_v19, 0.0 }
 0x484   : > { %v1073_v27 = vmax.f32 %v1055_v26, 0.0 }
 0x486   : > { %1449 = vmatprep.mubr.msk.f32.mxu1 %vm643_vm1, %v1073_v27 }
 0x487   : > { %1450 = vmatmul.mubr.msk.f32.vlgmr.msra.gmra.mxu1 %vm643_vm1, %v1074_v30 }
 0x48e   : > { %v1440_v31 = vpop.f32.mrf.mxu0 }
 0x48f   : > { %v1070_v34 = vadd.f32 %v1440_v31, %v1805_v44 }
 0x490   : > { %v1064_v35 = vpop.f32.mrf.mxu0 }
 0x491   : > { %v1065_v36 = vadd.f32 %v1805_v44, %v1064_v35  ;;  %v1076_v38 = vmax.f32 %v1070_v34, 0.0 }
 0x493   : > { %v1075_v37 = vmax.f32 %v1065_v36, 0.0 }
 0x495   : > { %1452 = vmatprep.mubr.msk.f32.mxu1 %vm643_vm1, %v1075_v37 }
 0x496   : > { %1453 = vmatmul.mubr.msk.f32.gmra.mxu1 %vm643_vm1, %v1076_v38 }
 0x547   : > { %v1451_v40 = vpop.f32.mrf.mxu1 }
 0x548   : > { %v1172_v41 = vadd.f32 %v1451_v40, %v1308_v39 }
 0x549   : > { %v1166_v42 = vpop.f32.mrf.mxu1 }
 0x54a   : > { %v1167_v43 = vadd.f32 %v1308_v39, %v1166_v42  ;;  %1186 = vrot.lane.b32.xlu1 %v1172_v41, %s1579_s22  ;;  %s1204_s22 = scalar_lea.sflag [#allocation4], %s407_s29 }
 0x556   : > { %v1454_v45 = vpop.f32.mrf.mxu1 }
 0x557   : > { %v1182_v44 = vadd.f32 %v1454_v45, %v1308_v39 }
 0x558   : > { %v1176_v46 = vpop.f32.mrf.mxu1 }
 0x559   : > { %v1177_v47 = vadd.f32 %v1308_v39, %v1176_v46  ;;  %1194 = vrot.lane.b32.xlu1 %v1182_v44, %s1580_s21  ;;  %s1516_s21 = scalar_lea.vmem %s1218_s18, 128 }
 0x55a   : > { %p1517_p11 = scmp.ne.s32.totalorder %s1218_s18, %s1516_s21 }
 0x55b   : > { %1190 = vrot.lane.b32.xlu0 %v1177_v47, %s1581_s27  ;;  %s1520_s27 = sshll.u32 %s1582_s9, 4  ;;  %s1521_s27 = int_to_ptr.vmem [resolvable:$false] %s1520_s27 }
 0x55c   : > { %p1518_p12 = pnand %p1517_p11, %p1689_p5  ;;  %s1522_s30 = scalar_lea.vmem %s1521_s27, 256 }
 0x55d   : > { %p1523_p0 = scmp.lt.s32.totalorder %s1218_s18, %s1521_s27  ;;  %p1524_p1 = scmp.lt.s32.totalorder %s1522_s30, %s1516_s21 }
 0x55e   : > { %p1519_p13 = pneg %p1518_p12 }
 0x55f   : > { %p1525_p2 = por %p1524_p1, %p1523_p0 }
 0x561   : > { %p1526_p3 = pnand %p1525_p2, %p1519_p13 }
 0x5bc   : > { %v1187_v48 = vpop.permute.xlu1 %1186 }
 0x5bd   : > { %v1197_v49 = vsel %vm643_vm1, %v1167_v43, %v1187_v48 }
 0x5cb   : > { %v1195_v51 = vpop.permute.xlu1 %1194 }
 0x5cd   : > { %v1191_v50 = vpop.permute.xlu0 %1190 }
 0x5ce   : > { %v1199_v52 = vsel %vm1198_vm3, %v1197_v49, %v1191_v50 }
 0x5cf   : > { %v1201_v53 = vsel %vm1200_vm4, %v1199_v52, %v1195_v51 }
 0x5d0   : > { %1202 = vst [vmem:[%s409_s17] sm:$0xff] %v1201_v53 }
 0x5d1   : > { %1529 = shalt.err (!%p1526_p3)
}
 0x5d2   : > { %s1530_s16 = scalar_lea.hbm %s1866_s13, 128  ;;  %s1534_s19 = scalar_lea.hbm %s1913_s12, 256 }
 0x5d3   : > { %p1531_p4 = scmp.ne.s32.totalorder %s1866_s13, %s1530_s16  ;;  %p1535_p9 = scmp.lt.s32.totalorder %s1866_s13, %s1913_s12 }
 0x5d4   : > { %p1536_p10 = scmp.lt.s32.totalorder %s1534_s19, %s1530_s16 }
 0x5d5   : > { %p1532_p7 = pnand %p1531_p4, %p1689_p5 }
 0x5d6   : > { %p1537_p11 = por %p1536_p10, %p1535_p9 }
 0x5d7   : > { %p1533_p8 = pneg %p1532_p7 }
 0x5d9   : > { %p1538_p12 = pnand %p1537_p11, %p1533_p8 }
 0x5db   : > { %1541 = shalt.err (!%p1538_p12)
}
 0x5dc   : > { %1455 = dma.vmem_to_hbm [thread:$0]  (%p1689_p5), %s1218_s18, 128, %s1866_s13, %s1204_s22  }
 0x5dd PF: > { %p1461_p13 = scmp.ge.s32.totalorder %s1576_s26, 2  ;;  %s1229_s21 = sand.u32 1, %s1564_s23  }
 0x5de   : > { %s1230_s27 = scalar_lea.sflag [#allocation4], %s1229_s21 }
 0x5df   : > { %p1458_p0 = pnand %p1461_p13, %p1693_p6 }
 0x5e1   : > { %p1459_p1 = pneg %p1458_p0 }
 0x5e3   : > { %1559 = dma.done.wait (%p1459_p1), %s1230_s27, 128  }
 0x5e4   : > { %1561 = vsyncadd (%p1459_p1), %s1230_s27, 4294967168  ;;  %s1917_s30 = sld [smem:[#allocation6_spill]]  ;;  %p24_p2 = scmp.ge.s32.totalorder %s1676_s28, 4  }
 0x5e5   : > { %s1918_s23 = smov %s1568_s24  ;;  %s1919_s24 = smov %s1572_s25 }
 0x5e6   : > { %s1921_s26 = smov %s1676_s28  ;;  %26 = sbr.rel (!%p24_p2) target bundleno = 6 (0x6), region = 103 }
 0x5ea   : > { %s1920_s25 = smov %s1917_s30 }
 0x5eb   :  { %1235 = vsyncpa [#allocation4], 1 }
 0x5ec   :  { %1237 = vsyncpa [#allocation4 + $0x1], 1 }

</bundles_post_ra>
